<compile_context>
chip_gen: v7x
topology: tpu7x:2x2x1
jax: 0.10.0
libtpu: 0.0.40
codegen_flags: <defaults>
</compile_context>

<pallas_src>
import functools

import jax
import jax.numpy as jnp
from jax.experimental import pallas as pl
from jax.experimental.pallas import tpu as pltpu

_EPS = 1e-5


# ------------------------------------------------------------ in-kernel util -
def _reduce_cols(t):
    """(N, c_blk, HW) -> (c_blk, 1): cheap sublane add over N, XLU lane reduce."""
    return jnp.sum(jnp.sum(t, axis=0), axis=-1, keepdims=True)


# ------------------------------------------------------ primary fused kernels -
def _bn_train_kernel(x_ref, g_ref, b_ref, o_ref, mean_ref, std_ref, *, inv_count):
    """One grid step = one channel block; full (N, c_blk, HW) slab resident."""
    x = x_ref[...].astype(jnp.float32)                  # (N, c_blk, HW)
    mean = _reduce_cols(x) * inv_count                  # (c_blk, 1)
    xc = x - mean
    var = _reduce_cols(xc * xc) * inv_count
    std = jnp.sqrt(var + _EPS)                          # per-channel column
    scale = g_ref[...] * (1.0 / std)                    # column-only divide (cheap)
    o_ref[...] = (xc * scale + b_ref[...]).astype(o_ref.dtype)   # mul+add / element
    mean_ref[...] = mean
    std_ref[...] = std


def _bn_eval_kernel(x_ref, rm_ref, irv_ref, g_ref, b_ref,
                    o_ref, mean_ref, var2_ref, *, inv_count):
    x = x_ref[...].astype(jnp.float32)                  # (N, c_blk, HW)
    y = (x - rm_ref[...]) * irv_ref[...]                # multiply, not divide
    m = _reduce_cols(y) * inv_count                     # (c_blk, 1)
    yc = y - m
    v2 = _reduce_cols(yc * yc) * inv_count
    o_ref[...] = (y * g_ref[...] + b_ref[...]).astype(o_ref.dtype)
    mean_ref[...] = m
    var2_ref[...] = v2


# ------------------------------------------- fallback (large N*H*W) kernels ---
def _bn_stats_kernel(x_ref, mean_ref, var_ref, sum_ref, sumsq_ref, *, inv_count):
    """Grid (c_blocks, n_blocks): stream sum / sum-of-squares per channel."""
    @pl.when(pl.program_id(1) == 0)
    def _():
        sum_ref[...] = jnp.zeros_like(sum_ref)
        sumsq_ref[...] = jnp.zeros_like(sumsq_ref)

    x = x_ref[...].astype(jnp.float32)                  # (n_blk, c_blk, HW)
    sum_ref[...] += _reduce_cols(x)
    sumsq_ref[...] += _reduce_cols(x * x)

    @pl.when(pl.program_id(1) == pl.num_programs(1) - 1)
    def _():
        mean = sum_ref[...] * inv_count
        # TODO(synk): E[x^2]-E[x]^2 loses precision when |mean| >> std; a second
        # (x-mean)^2 streaming pass would match the reference bit-for-bit.
        var = jnp.maximum(sumsq_ref[...] * inv_count - mean * mean, 0.0)
        mean_ref[...] = mean
        var_ref[...] = var


def _bn_apply_kernel(x_ref, scale_ref, shift_ref, o_ref):
    x = x_ref[...].astype(jnp.float32)
    o_ref[...] = (x * scale_ref[...] + shift_ref[...]).astype(o_ref.dtype)


# ---------------------------------------------------------------- helpers ----
def _itemsize(dt):
    return jnp.dtype(dt).itemsize


def _sublane_multiple(dt):
    # f32 -> 8, bf16 -> 16, int8/fp8 -> 32 (sublane packing)
    return max(8, 32 // max(_itemsize(dt), 1))


def _vmem_budget():
    """(per-step in+out slab budget, vmem_limit_bytes) -- generation aware."""
    try:
        cap = pltpu.get_tpu_info().vmem_capacity_bytes
    except Exception:                       # pragma: no cover - conservative default
        cap = 64 * 1024 * 1024              # v7x per-core VMEM
    vmem_limit = int((cap * 3) // 4)        # leave headroom for scratch/internal
    slab_budget = vmem_limit // 6           # x2 double-buffer + f32 temporaries
    return slab_budget, vmem_limit


def _c_block_candidates(C, sub):
    return sorted({c for c in range(sub, C + 1, sub) if C % c == 0} | {C})


def _pick_c_block(C, per_channel_bytes, sub, budget):
    fits = [c for c in _c_block_candidates(C, sub) if c * per_channel_bytes <= budget]
    if not fits:
        return None                         # -> two-pass tiled path
    # Prefer >=4 grid steps with >=1 MiB slabs, then >=2 steps (v7x megacore),
    # else the largest block that fits (grid of 1).
    for min_steps, min_slab in ((4, 1 << 20), (2, 0)):
        ok = [c for c in fits
              if C // c >= min_steps and c * per_channel_bytes >= min_slab]
        if ok:
            return max(ok)
    return max(fits)


def _pick_n_block(N, per_sample_bytes, budget):
    # TODO(synk): also tile the H*W axis when a single (1, c_blk, HW) slab
    # exceeds the budget (not reachable at CIFAR scales).
    best = 1
    for nb in range(1, N + 1):
        if N % nb == 0 and nb * per_sample_bytes <= budget:
            best = nb
    return best


def _col(v, C):
    return jnp.asarray(v, jnp.float32).reshape(C, 1)


def _affine_cols(myweight, mybias, C, affine):
    if affine:
        return _col(myweight, C), _col(mybias, C)
    return jnp.ones((C, 1), jnp.float32), jnp.zeros((C, 1), jnp.float32)


def _col_spec_1(c_blk):
    return pl.BlockSpec((c_blk, 1), lambda c: (c, 0))


def _col_spec_2(c_blk):
    return pl.BlockSpec((c_blk, 1), lambda c, n: (c, 0))


def _stats_two_pass(x3, c_blk, slab_budget, vmem_limit):
    N, C, HW = x3.shape
    per_sample = c_blk * HW * _itemsize(x3.dtype)
    n_blk = _pick_n_block(N, per_sample, slab_budget)
    inv_count = 1.0 / float(N * HW)
    mean, var = pl.pallas_call(
        functools.partial(_bn_stats_kernel, inv_count=inv_count),
        out_shape=(jax.ShapeDtypeStruct((C, 1), jnp.float32),
                   jax.ShapeDtypeStruct((C, 1), jnp.float32)),
        grid_spec=pltpu.PrefetchScalarGridSpec(
            num_scalar_prefetch=0,
            grid=(C // c_blk, N // n_blk),
            in_specs=[pl.BlockSpec((n_blk, c_blk, HW), lambda c, n: (n, c, 0))],
            out_specs=[_col_spec_2(c_blk), _col_spec_2(c_blk)],
            scratch_shapes=[pltpu.VMEM((c_blk, 1), jnp.float32),
                            pltpu.VMEM((c_blk, 1), jnp.float32)],
        ),
        compiler_params=pltpu.CompilerParams(
            dimension_semantics=("parallel", "arbitrary"),
            vmem_limit_bytes=vmem_limit),
    )(x3)
    return mean, var


def _apply_scale_shift(x3, scale, shift, c_blk, slab_budget, vmem_limit):
    N, C, HW = x3.shape
    per_sample = c_blk * HW * 2 * _itemsize(x3.dtype)    # in + out
    n_blk = _pick_n_block(N, per_sample, slab_budget)
    return pl.pallas_call(
        _bn_apply_kernel,
        out_shape=jax.ShapeDtypeStruct((N, C, HW), x3.dtype),
        grid_spec=pltpu.PrefetchScalarGridSpec(
            num_scalar_prefetch=0,
            grid=(C // c_blk, N // n_blk),
            in_specs=[pl.BlockSpec((n_blk, c_blk, HW), lambda c, n: (n, c, 0)),
                      _col_spec_2(c_blk), _col_spec_2(c_blk)],
            out_specs=pl.BlockSpec((n_blk, c_blk, HW), lambda c, n: (n, c, 0)),
        ),
        compiler_params=pltpu.CompilerParams(
            dimension_semantics=("parallel", "parallel"),
            vmem_limit_bytes=vmem_limit),
    )(x3, scale, shift)


# --------------------------------------------------------------- wrappers ----
def my_batch_norm_train(x, myweight, mybias, run_mean, run_var,
                        momentum=0.1, affine=True, *, force_two_pass=False):
    """Training-mode forward. Returns (out, mean, Var, new_run_mean, new_run_var)."""
    N, C, H, W = x.shape
    HW = H * W
    x3 = x.reshape(N, C, HW)                 # free: NCHW is (N, C, H*W)-contiguous
    g, b = _affine_cols(myweight, mybias, C, affine)
    slab_budget, vmem_limit = _vmem_budget()
    sub = _sublane_multiple(x.dtype)
    per_channel = N * HW * 2 * _itemsize(x.dtype)        # in + out per channel row
    c_blk = None if force_two_pass else _pick_c_block(C, per_channel, sub, slab_budget)
    inv_count = 1.0 / float(N * HW)

    if c_blk is not None:
        out3, mean_c, std_c = pl.pallas_call(
            functools.partial(_bn_train_kernel, inv_count=inv_count),
            out_shape=(jax.ShapeDtypeStruct((N, C, HW), x.dtype),
                       jax.ShapeDtypeStruct((C, 1), jnp.float32),
                       jax.ShapeDtypeStruct((C, 1), jnp.float32)),
            grid_spec=pltpu.PrefetchScalarGridSpec(
                num_scalar_prefetch=0,
                grid=(C // c_blk,),
                in_specs=[pl.BlockSpec((N, c_blk, HW), lambda c: (0, c, 0)),
                          _col_spec_1(c_blk), _col_spec_1(c_blk)],
                out_specs=[pl.BlockSpec((N, c_blk, HW), lambda c: (0, c, 0)),
                           _col_spec_1(c_blk), _col_spec_1(c_blk)],
            ),
            compiler_params=pltpu.CompilerParams(
                dimension_semantics=("parallel",),
                vmem_limit_bytes=vmem_limit),
        )(x3, g, b)
    else:
        # Channel row too big for VMEM: streaming stats pass + scale/shift pass.
        c_blk_fb = _c_block_candidates(C, sub)[0]
        mean_c, var_c = _stats_two_pass(x3, c_blk_fb, slab_budget, vmem_limit)
        std_c = jnp.sqrt(var_c + _EPS)
        scale = g / std_c                    # per-channel columns only
        shift = b - mean_c * scale
        out3 = _apply_scale_shift(x3, scale, shift, c_blk_fb, slab_budget, vmem_limit)

    out = out3.reshape(N, C, H, W)
    mean = mean_c.reshape(1, C, 1, 1)
    var = std_c.reshape(1, C, 1, 1)          # module's "Var" is a stddev
    new_run_mean = run_mean * (1.0 - momentum) + momentum * mean
    new_run_var = run_var * (1.0 - momentum) + momentum * var
    return out, mean, var, new_run_mean, new_run_var


def my_batch_norm_eval(x, myweight, mybias, run_mean, run_var,
                       test_mean, test_var2, temp_number, affine=True,
                       *, force_two_pass=False):
    """Eval-mode forward. Returns (out, new_test_mean, new_test_var2, new_temp_number)."""
    N, C, H, W = x.shape
    HW = H * W
    x3 = x.reshape(N, C, HW)
    g, b = _affine_cols(myweight, mybias, C, affine)
    rm = _col(run_mean, C)
    irv = 1.0 / _col(run_var, C)             # per-channel reciprocal in the wrapper
    slab_budget, vmem_limit = _vmem_budget()
    sub = _sublane_multiple(x.dtype)
    per_channel = N * HW * 2 * _itemsize(x.dtype)
    c_blk = None if force_two_pass else _pick_c_block(C, per_channel, sub, slab_budget)
    inv_count = 1.0 / float(N * HW)

    if c_blk is not None:
        out3, Mean_c, Var2_c = pl.pallas_call(
            functools.partial(_bn_eval_kernel, inv_count=inv_count),
            out_shape=(jax.ShapeDtypeStruct((N, C, HW), x.dtype),
                       jax.ShapeDtypeStruct((C, 1), jnp.float32),
                       jax.ShapeDtypeStruct((C, 1), jnp.float32)),
            grid_spec=pltpu.PrefetchScalarGridSpec(
                num_scalar_prefetch=0,
                grid=(C // c_blk,),
                in_specs=[pl.BlockSpec((N, c_blk, HW), lambda c: (0, c, 0)),
                          _col_spec_1(c_blk), _col_spec_1(c_blk),
                          _col_spec_1(c_blk), _col_spec_1(c_blk)],
                out_specs=[pl.BlockSpec((N, c_blk, HW), lambda c: (0, c, 0)),
                           _col_spec_1(c_blk), _col_spec_1(c_blk)],
            ),
            compiler_params=pltpu.CompilerParams(
                dimension_semantics=("parallel",),
                vmem_limit_bytes=vmem_limit),
        )(x3, rm, irv, g, b)
    else:
        c_blk_fb = _c_block_candidates(C, sub)[0]
        mean_x, var_x = _stats_two_pass(x3, c_blk_fb, slab_budget, vmem_limit)
        Mean_c = (mean_x - rm) * irv          # stats of y = (x - rm)/rv, analytically
        Var2_c = var_x * irv * irv
        scale = g * irv
        shift = b - rm * scale
        out3 = _apply_scale_shift(x3, scale, shift, c_blk_fb, slab_budget, vmem_limit)

    out = out3.reshape(N, C, H, W)
    Mean = Mean_c.reshape(1, C, 1, 1)
    Var2 = Var2_c.reshape(1, C, 1, 1)
    new_test_mean = (test_mean * temp_number + Mean * N) / (temp_number + N)
    new_test_var2 = (test_var2 * temp_number + Var2 * N) / (temp_number + N)
    new_temp_number = temp_number + N
    return out, new_test_mean, new_test_var2, new_temp_number


# --------------------------------------------------------------- reference ---
def _ref_train(x, gamma, beta):
    mean = jnp.mean(x, axis=(0, 2, 3), keepdims=True)
    var = jnp.sqrt(jnp.mean((x - mean) ** 2, axis=(0, 2, 3), keepdims=True) + _EPS)
    y = (x - mean) / var
    if gamma is not None:
        y = y * gamma + beta
    return y, mean, var


def _ref_eval(x, run_mean, run_var, gamma, beta):
    y = (x - run_mean) / run_var
    Mean = jnp.mean(y, axis=(0, 2, 3), keepdims=True)
    Var2 = jnp.mean((y - Mean) ** 2, axis=(0, 2, 3), keepdims=True)
    out = y * gamma + beta if gamma is not None else y
    return out, Mean, Var2


# -------------------------------------------------------------------- main ---
if __name__ == "__main__":
    key = jax.random.PRNGKey(0)
    kx, kw, kb = jax.random.split(key, 3)
    N, C, H, W = 2, 4, 16, 16
    x = jax.random.normal(kx, (N, C, H, W), dtype=jnp.float32)

    # Module init is weight=1, bias=0; use non-trivial values to exercise the affine math.
    myweight = 1.0 + 0.1 * jax.random.normal(kw, (1, C, 1, 1), dtype=jnp.float32)
    mybias = 0.1 * jax.random.normal(kb, (1, C, 1, 1), dtype=jnp.float32)
    run_mean = jnp.zeros((1, C, 1, 1), jnp.float32)
    run_var = jnp.ones((1, C, 1, 1), jnp.float32)

    # --- training-mode forward (affine=True) ---
    out, mean, var, new_rm, new_rv = my_batch_norm_train(
        x, myweight, mybias, run_mean, run_var, momentum=0.1, affine=True)
    out = jax.block_until_ready(out)
    ref_out, ref_mean, ref_var = _ref_train(x, myweight, mybias)
    assert out.shape == x.shape and out.dtype == x.dtype
    assert jnp.allclose(out, ref_out, atol=1e-5, rtol=1e-5)
    assert jnp.allclose(mean, ref_mean, atol=1e-5, rtol=1e-5)
    assert jnp.allclose(var, ref_var, atol=1e-5, rtol=1e-5)
    assert jnp.allclose(new_rm, 0.9 * run_mean + 0.1 * ref_mean, atol=1e-5)
    assert jnp.allclose(new_rv, 0.9 * run_var + 0.1 * ref_var, atol=1e-5)

    # --- training-mode forward (affine=False) ---
    out_na, _, _, _, _ = my_batch_norm_train(
        x, None, None, run_mean, run_var, momentum=0.1, affine=False)
    out_na = jax.block_until_ready(out_na)
    ref_na, _, _ = _ref_train(x, None, None)
    assert jnp.allclose(out_na, ref_na, atol=1e-5, rtol=1e-5)

    # --- eval-mode forward ---
    test_mean = jnp.zeros((1, C, 1, 1), jnp.float32)
    test_var2 = jnp.ones((1, C, 1, 1), jnp.float32)
    temp_number = jnp.zeros((1,), jnp.float32)
    out_e, ntm, ntv2, ntn = my_batch_norm_eval(
        x, myweight, mybias, new_rm, new_rv, test_mean, test_var2, temp_number,
        affine=True)
    out_e = jax.block_until_ready(out_e)
    ref_oe, ref_Me, ref_V2 = _ref_eval(x, new_rm, new_rv, myweight, mybias)
    assert jnp.allclose(out_e, ref_oe, atol=1e-5, rtol=1e-5)
    assert jnp.allclose(ntm, ref_Me, atol=1e-5, rtol=1e-5)   # temp_number starts at 0
    assert jnp.allclose(ntv2, ref_V2, atol=1e-5, rtol=1e-5)
    assert jnp.allclose(ntn, jnp.full((1,), float(N)), atol=0.0)

    # --- exercise the large-input (two-pass, batch-tiled) fallback path ---
    out_fb, mean_fb, var_fb, _, _ = my_batch_norm_train(
        x, myweight, mybias, run_mean, run_var, momentum=0.1, affine=True,
        force_two_pass=True)
    out_fb = jax.block_until_ready(out_fb)
    assert jnp.allclose(out_fb, ref_out, atol=1e-4, rtol=1e-4)
    assert jnp.allclose(mean_fb, ref_mean, atol=1e-4, rtol=1e-4)
    assert jnp.allclose(var_fb, ref_var, atol=1e-4, rtol=1e-4)

    out_efb, ntm_fb, ntv2_fb, _ = my_batch_norm_eval(
        x, myweight, mybias, new_rm, new_rv, test_mean, test_var2, temp_number,
        affine=True, force_two_pass=True)
    out_efb = jax.block_until_ready(out_efb)
    assert jnp.allclose(out_efb, ref_oe, atol=1e-4, rtol=1e-4)
    assert jnp.allclose(ntm_fb, ref_Me, atol=1e-4, rtol=1e-4)
    assert jnp.allclose(ntv2_fb, ref_V2, atol=1e-4, rtol=1e-4)

    print("KERNEL_OK")
</pallas_src>

<mosaic_0001>
module attributes {stable_mosaic.version = 11 : i64} {
  func.func @_bn_train_kernel(%arg0: i32, %arg1: memref<2x4x256xf32, #tpu.memory_space<vmem>>, %arg2: memref<4x1xf32, #tpu.memory_space<vmem>>, %arg3: memref<4x1xf32, #tpu.memory_space<vmem>>, %arg4: memref<2x4x256xf32, #tpu.memory_space<vmem>>, %arg5: memref<4x1xf32, #tpu.memory_space<vmem>>, %arg6: memref<4x1xf32, #tpu.memory_space<vmem>>) attributes {dimension_semantics = [#tpu.dimension_semantics<parallel>], iteration_bounds = array<i64: 1>, scalar_prefetch = 0 : i64, scratch_operands = 0 : i64, tpu.core_type = #tpu.core_type<tc>, window_params = [{transform_indices = @transform_0, window_bounds = array<i64: 2, 4, 256>}, {transform_indices = @transform_1, window_bounds = array<i64: 4, 1>}, {transform_indices = @transform_2, window_bounds = array<i64: 4, 1>}, {transform_indices = @transform_3, window_bounds = array<i64: 2, 4, 256>}, {transform_indices = @transform_4, window_bounds = array<i64: 4, 1>}, {transform_indices = @transform_5, window_bounds = array<i64: 4, 1>}]} {
    %c0 = arith.constant 0 : index
    %c0_0 = arith.constant 0 : index
    %c0_1 = arith.constant 0 : index
    %0 = vector.load %arg1[%c0, %c0_0, %c0_1] : memref<2x4x256xf32, #tpu.memory_space<vmem>>, vector<2x4x256xf32>
    %cst = arith.constant dense<0.000000e+00> : vector<4x256xf32>
    %1 = vector.multi_reduction <add>, %0, %cst [0] : vector<2x4x256xf32> to vector<4x256xf32>
    %cst_2 = arith.constant dense<0.000000e+00> : vector<4xf32>
    %2 = vector.multi_reduction <add>, %1, %cst_2 [1] : vector<4x256xf32> to vector<4xf32>
    %3 = vector.shape_cast %2 : vector<4xf32> to vector<4x1xf32>
    %cst_3 = arith.constant 0.001953125 : f32
    %4 = vector.broadcast %cst_3 : f32 to vector<4x1xf32>
    %5 = arith.mulf %3, %4 : vector<4x1xf32>
    %6 = vector.shape_cast %5 : vector<4x1xf32> to vector<1x4x1xf32>
    %7 = vector.broadcast %6 : vector<1x4x1xf32> to vector<2x4x256xf32>
    %8 = arith.subf %0, %7 : vector<2x4x256xf32>
    %9 = arith.mulf %8, %8 : vector<2x4x256xf32>
    %cst_4 = arith.constant dense<0.000000e+00> : vector<4x256xf32>
    %10 = vector.multi_reduction <add>, %9, %cst_4 [0] : vector<2x4x256xf32> to vector<4x256xf32>
    %cst_5 = arith.constant dense<0.000000e+00> : vector<4xf32>
    %11 = vector.multi_reduction <add>, %10, %cst_5 [1] : vector<4x256xf32> to vector<4xf32>
    %12 = vector.shape_cast %11 : vector<4xf32> to vector<4x1xf32>
    %cst_6 = arith.constant 0.001953125 : f32
    %13 = vector.broadcast %cst_6 : f32 to vector<4x1xf32>
    %14 = arith.mulf %12, %13 : vector<4x1xf32>
    %cst_7 = arith.constant 9.99999974E-6 : f32
    %15 = vector.broadcast %cst_7 : f32 to vector<4x1xf32>
    %16 = arith.addf %14, %15 : vector<4x1xf32>
    %17 = math.sqrt %16 : vector<4x1xf32>
    %c0_8 = arith.constant 0 : index
    %c0_9 = arith.constant 0 : index
    %18 = vector.load %arg2[%c0_8, %c0_9] : memref<4x1xf32, #tpu.memory_space<vmem>>, vector<4x1xf32>
    %cst_10 = arith.constant 1.000000e+00 : f32
    %19 = vector.broadcast %cst_10 : f32 to vector<4x1xf32>
    %20 = arith.divf %19, %17 : vector<4x1xf32>
    %21 = arith.mulf %18, %20 : vector<4x1xf32>
    %22 = vector.shape_cast %21 : vector<4x1xf32> to vector<1x4x1xf32>
    %23 = vector.broadcast %22 : vector<1x4x1xf32> to vector<2x4x256xf32>
    %24 = arith.mulf %8, %23 : vector<2x4x256xf32>
    %c0_11 = arith.constant 0 : index
    %c0_12 = arith.constant 0 : index
    %25 = vector.load %arg3[%c0_11, %c0_12] : memref<4x1xf32, #tpu.memory_space<vmem>>, vector<4x1xf32>
    %26 = vector.shape_cast %25 : vector<4x1xf32> to vector<1x4x1xf32>
    %27 = vector.broadcast %26 : vector<1x4x1xf32> to vector<2x4x256xf32>
    %28 = arith.addf %24, %27 : vector<2x4x256xf32>
    %c0_13 = arith.constant 0 : index
    %c0_14 = arith.constant 0 : index
    %c0_15 = arith.constant 0 : index
    %29 = vector.load %arg4[%c0_13, %c0_14, %c0_15] : memref<2x4x256xf32, #tpu.memory_space<vmem>>, vector<2x4x256xf32>
    tpu.vector_store %arg4[%c0_13, %c0_14, %c0_15], %28 {strides = array<i32>} : memref<2x4x256xf32, #tpu.memory_space<vmem>>, vector<2x4x256xf32>,
    %c0_16 = arith.constant 0 : index
    %c0_17 = arith.constant 0 : index
    %30 = vector.load %arg5[%c0_16, %c0_17] : memref<4x1xf32, #tpu.memory_space<vmem>>, vector<4x1xf32>
    tpu.vector_store %arg5[%c0_16, %c0_17], %5 {strides = array<i32>} : memref<4x1xf32, #tpu.memory_space<vmem>>, vector<4x1xf32>,
    %c0_18 = arith.constant 0 : index
    %c0_19 = arith.constant 0 : index
    %31 = vector.load %arg6[%c0_18, %c0_19] : memref<4x1xf32, #tpu.memory_space<vmem>>, vector<4x1xf32>
    tpu.vector_store %arg6[%c0_18, %c0_19], %17 {strides = array<i32>} : memref<4x1xf32, #tpu.memory_space<vmem>>, vector<4x1xf32>,
    return
  }
  func.func @transform_0(%arg0: i32) -> (i32, i32, i32) {
    %c0_i32 = arith.constant 0 : i32
    %c0_i32_0 = arith.constant 0 : i32
    %c0_i32_1 = arith.constant 0 : i32
    return %c0_i32, %arg0, %c0_i32_0 : i32, i32, i32
  }
  func.func @transform_1(%arg0: i32) -> (i32, i32) {
    %c0_i32 = arith.constant 0 : i32
    %c0_i32_0 = arith.constant 0 : i32
    return %arg0, %c0_i32 : i32, i32
  }
  func.func @transform_2(%arg0: i32) -> (i32, i32) {
    %c0_i32 = arith.constant 0 : i32
    %c0_i32_0 = arith.constant 0 : i32
    return %arg0, %c0_i32 : i32, i32
  }
  func.func @transform_3(%arg0: i32) -> (i32, i32, i32) {
    %c0_i32 = arith.constant 0 : i32
    %c0_i32_0 = arith.constant 0 : i32
    %c0_i32_1 = arith.constant 0 : i32
    return %c0_i32, %arg0, %c0_i32_0 : i32, i32, i32
  }
  func.func @transform_4(%arg0: i32) -> (i32, i32) {
    %c0_i32 = arith.constant 0 : i32
    %c0_i32_0 = arith.constant 0 : i32
    return %arg0, %c0_i32 : i32, i32
  }
  func.func @transform_5(%arg0: i32) -> (i32, i32) {
    %c0_i32 = arith.constant 0 : i32
    %c0_i32_0 = arith.constant 0 : i32
    return %arg0, %c0_i32 : i32, i32
  }
}

</mosaic_0001>

<bundles_post_ra>
// kernel: tpu_custom_call.1
= control target key start
LH: loop header
LB: loop body
LE: loop exit
PB: predicated region body
PF: predicated region fallthrough
CT: control target
= control target key end

     0   :  { %11 = vsyncpa [#allocation3], 0  ;;  %s309_s0 = inlined_call_operand.hbm [shape: f32[2,4,256], index: 0, kind: input, shape index: {}]   ;;  %s310_s1 = inlined_call_operand.vmem [shape: f32[4,1], index: 1, kind: input, shape index: {}]   ;;  %s311_s2 = inlined_call_operand.vmem [shape: f32[4,1], index: 2, kind: input, shape index: {}]   ;;  %s312_s3 = inlined_call_operand.hbm [shape: f32[2,4,256], index: 3, kind: output, shape index: {0}]   ;;  %s313_s4 = inlined_call_operand.vmem [shape: f32[4,1], index: 4, kind: output, shape index: {1}]   ;;  %s314_s5 = inlined_call_operand.vmem [shape: f32[4,1], index: 5, kind: output, shape index: {2}]  }
   0x1   :  { %12 = vsyncpa [#allocation4], 0  ;;  %s217_s18 = smov [#allocation2]   ;;  %s169_s22 = scalar_lea.hbm %s309_s0, 256 }
   0x2   :  { %s18_s19 = sshll.u32 %s217_s18, 4  ;;  %p170_p0 = scmp.ne.s32.totalorder %s309_s0, %s169_s22  ;;  %s19_s19 = int_to_ptr.vmem [resolvable:$true] %s18_s19 }
   0x3   :  { %p173_p1 = scmp.lt.u32.totalorder %s169_s22, %s309_s0 }
   0x5   :  { %p175_p2 = pnand %p173_p1, %p170_p0 }
   0x7   :  { %178 = shalt.err (!%p175_p2)
}
   0x8   :  { %s179_s27 = scalar_lea.vmem %s19_s19, 256  ;;  %p184_p4 = scmp.lt.s32.totalorder %s19_s19, %s19_s19 }
   0x9   :  { %p180_p3 = scmp.ne.s32.totalorder %s19_s19, %s179_s27  ;;  %p185_p5 = scmp.lt.s32.totalorder %s179_s27, %s179_s27 }
   0xb   :  { %p186_p6 = por %p185_p5, %p184_p4 }
   0xd   :  { %p187_p7 = pnand %p186_p6, %p180_p3 }
   0xf   :  { %190 = shalt.err (!%p187_p7)
}
  0x10   :  { %s218_s28 = smov 128   ;;  %s219_s29 = smov 8  }
  0x11   :  { %24 = dma.hbm_to_vmem [thread:$0]  %s309_s0, 256, %s19_s19, [#allocation3], %s218_s28, %s218_s28, %s219_s29  }
  0x12   :  { %213 = dma.done.wait [#allocation3], 256  }
  0x13   :  { %214 = vsyncadd [#allocation3], 4294967040  ;;  %vm40_vm0 = vcmask 1043456   ;;  %v32_v0 = vld [vmem:[#allocation2] sm:$0xff]  ;;  %v33_v1 = vld [vmem:[#allocation2 + $0x8] sm:$0xff]  ;;  %v57_v15 = vlaneseq  ;;  %vm127_vm1 = vcmask 3072  }
  0x14   :  { %v36_v2 = vcombine.high %v32_v0, %v32_v0  ;;  %v37_v3 = vcombine.high %v33_v1, %v33_v1  ;;  %v41_v4 = vsel %vm40_vm0, %v32_v0, 0.0  ;;  %v42_v5 = vsel %vm40_vm0, %v33_v1, 0.0  ;;  %v92_v46 = vld [vmem:[%s310_s1] sm:$0xf]  ;;  %s222_s13 = smov [#allocation5]  }
  0x15   :  { %v43_v6 = vadd.f32 %v42_v5, %v41_v4  ;;  %v220_v13 = vmov 839922192   ;;  %v58_v17 = vshrl.u32 %v57_v15, 7  ;;  %v221_v37 = vmov 0   ;;  %v110_v49 = vld [vmem:[%s311_s2] sm:$0xf] }
  0x16   :  { %v44_v7 = vsel %vm40_vm0, %v36_v2, 0.0  ;;  %v45_v8 = vsel %vm40_vm0, %v37_v3, 0.0  ;;  %v55_v14 = vunpack.c.l.s4 %v220_v13  ;;  %161 = vset.pattern.permute.xlu1 %v221_v37  ;;  %162 = vset.pattern.permute.xlu0 %v221_v37  ;;  %s135_s14 = sshll.u32 %s222_s13, 4  ;;  %s136_s14 = int_to_ptr.vmem [resolvable:$true] %s135_s14 }
  0x17   :  { %v46_v9 = vadd.f32 %v45_v8, %v44_v7  ;;  %v47_v10 = vsel %vm40_vm0, %v43_v6, 0.0  ;;  %s191_s1 = scalar_lea.vmem %s136_s14, 256  ;;  %p196_p9 = scmp.lt.s32.totalorder %s136_s14, %s136_s14 }
  0x18   :  { %v56_v16 = vunpack.c.0.s8 %v55_v14  ;;  %p192_p8 = scmp.ne.s32.totalorder %s136_s14, %s191_s1  ;;  %p197_p10 = scmp.lt.s32.totalorder %s191_s1, %s191_s1 }
  0x19   :  { %v48_v11 = vsel %vm40_vm0, %v46_v9, 0.0 }
  0x1a   :  { %v49_v12 = vadd.f32 %v48_v11, %v47_v10  ;;  %v59_v18 = vsub.s32 %v56_v16, %v58_v17  ;;  %p198_p11 = por %p197_p10, %p196_p9 }
  0x1c   :  { %50 = vadd.xlane.f32.xlu0 %v49_v12  ;;  %p199_p12 = pnand %p198_p11, %p192_p8 }
  0xa9   :  { %v51_v19 = vpop.xlane.xlu0 %50 }
  0xaa   :  { %v52_v20 = vmul.f32 0.001953125, %v51_v19 }
  0xac   :  { %v60_v21 = vrot.slane %v52_v20, %v59_v18  ;;  %128 = vst.msk [vmem:[%s313_s4] sm:$0xf] %vm127_vm1, %v52_v20 }
  0xae   :  { %v62_v22 = vsub.f32 %v32_v0, %v60_v21  ;;  %v63_v23 = vsub.f32 %v33_v1, %v60_v21 }
  0xb0   :  { %v64_v24 = vmul.f32 %v62_v22, %v62_v22  ;;  %v65_v25 = vmul.f32 %v63_v23, %v63_v23 }
  0xb2   :  { %v68_v26 = vcombine.high %v64_v24, %v64_v24  ;;  %v69_v27 = vcombine.high %v65_v25, %v65_v25  ;;  %v72_v28 = vsel %vm40_vm0, %v64_v24, 0.0  ;;  %v73_v29 = vsel %vm40_vm0, %v65_v25, 0.0 }
  0xb3   :  { %v74_v30 = vadd.f32 %v73_v29, %v72_v28 }
  0xb4   :  { %v75_v31 = vsel %vm40_vm0, %v68_v26, 0.0  ;;  %v76_v32 = vsel %vm40_vm0, %v69_v27, 0.0 }
  0xb5   :  { %v77_v33 = vadd.f32 %v76_v32, %v75_v31  ;;  %v78_v34 = vsel %vm40_vm0, %v74_v30, 0.0 }
  0xb7   :  { %v79_v35 = vsel %vm40_vm0, %v77_v33, 0.0 }
  0xb8   :  { %v80_v36 = vadd.f32 %v79_v35, %v78_v34 }
  0xba   :  { %81 = vadd.xlane.f32.xlu0 %v80_v36 }
 0x147   :  { %v82_v38 = vpop.xlane.xlu0 %81 }
 0x148   :  { %v83_v39 = vmul.f32 0.001953125, %v82_v38 }
 0x14a   :  { %v84_v40 = vadd.f32 1e-05, %v83_v39 }
 0x14c   :  { %165 = vrsqrt.f32 %v84_v40  ;;  %vm87_vm2 = vcmp.eq.f32.partialorder %v84_v40, inf  ;;  %v90_v43 = vand.u32 2147483648, %v84_v40  ;;  %vm89_vm3 = vcmp.eq.f32.partialorder %v84_v40, 0.0 }
 0x156   :  { %v166_v41 = vpop.eup %165 }
 0x157   :  { %v86_v42 = vmul.f32 %v166_v41, %v84_v40 }
 0x159   :  { %v88_v44 = vsel %vm87_vm2, %v84_v40, %v86_v42 }
 0x15a   :  { %v91_v45 = vsel %vm89_vm3, %v90_v43, %v88_v44 }
 0x15b   :  { %167 = vrcp.f32 %v91_v45  ;;  %129 = vst.msk [vmem:[%s314_s5] sm:$0xf] %vm127_vm1, %v91_v45 }
 0x165   :  { %v168_v47 = vpop.eup %167 }
 0x166   :  { %v95_v48 = vmul.f32 %v168_v47, %v92_v46 }
 0x168   :  { %98 = vperm.xlu1 %161, %v95_v48  }
 0x16c   :  { %113 = vperm.xlu1 %161, %v110_v49  }
 0x1e7   :  { %v99_v50 = vpop.permute.xlu1 %98 }
 0x1e8   :  { %v106_v51 = vrot.slane %v99_v50, %v59_v18 }
 0x1ea   :  { %v108_v53 = vmul.f32 %v106_v51, %v62_v22  ;;  %v109_v54 = vmul.f32 %v106_v51, %v63_v23 }
 0x1eb   :  { %v114_v52 = vpop.permute.xlu1 %113 }
 0x1ec   :  { %v121_v55 = vrot.slane %v114_v52, %v59_v18 }
 0x1ee   :  { %v123_v56 = vadd.f32 %v121_v55, %v108_v53  ;;  %v124_v57 = vadd.f32 %v121_v55, %v109_v54 }
 0x1f0   :  { %125 = vst [vmem:[#allocation5] sm:$0xff] %v123_v56  ;;  %126 = vst [vmem:[#allocation5 + $0x8] sm:$0xff] %v124_v57 }
 0x1f1   :  { %202 = shalt.err (!%p199_p12)
}
 0x1f2   :  { %s203_s15 = scalar_lea.hbm %s312_s3, 256 }
 0x1f3   :  { %p204_p13 = scmp.ne.s32.totalorder %s312_s3, %s203_s15  ;;  %p207_p0 = scmp.lt.u32.totalorder %s203_s15, %s312_s3 }
 0x1f5   :  { %p209_p1 = pnand %p207_p0, %p204_p13 }
 0x1f7   :  { %212 = shalt.err (!%p209_p1)
}
 0x1f8   :  { %141 = dma.vmem_to_hbm [thread:$0]  %s136_s14, 256, %s312_s3, [#allocation4], %s218_s28, %s218_s28, %s219_s29  }
 0x1f9   :  { %215 = dma.done.wait [#allocation4], 256  }
 0x1fa   :  { %216 = vsyncadd [#allocation4], 4294967040 }
 0x1fb   :  { %153 = vsyncpa [#allocation3], 1 }
 0x1fc   :  { %154 = vsyncpa [#allocation4], 1 }

</bundles_post_ra>
